<compile_context>
chip_gen: v5e
topology: v5e:2x2
jax: 0.10.0
libtpu: 0.0.40
codegen_flags: <defaults>
</compile_context>

<pallas_src>
import functools

import jax
import jax.numpy as jnp
from jax.experimental import pallas as pl
from jax.experimental.pallas import tpu as pltpu


def _round_up(x, m):
    return ((x + m - 1) // m) * m


def _linear_kernel(num_hidden_layers, out_is_scalar,
                   x_ref, w_red_ref, w_h_ref,
                   bn_scale_ref, bn_shift_ref,
                   w_out_ref, b_out_ref,
                   o_ref):
    # Input layer (folded): (TB, I)bf16 @ (I, H)bf16 -> f32, BN affine (bias folded), ReLU.
    z = jnp.dot(x_ref[...].astype(jnp.bfloat16), w_red_ref[...],
                preferred_element_type=jnp.float32)
    h = z * bn_scale_ref[0:1, :] + bn_shift_ref[0:1, :]
    h = jnp.maximum(h, 0.0)                      # dropout(relu(.)) == relu(.) in eval mode

    # Hidden residual blocks (static unroll).
    for i in range(num_hidden_layers):
        identity = h
        z = jnp.dot(h.astype(jnp.bfloat16), w_h_ref[i],
                    preferred_element_type=jnp.float32)
        z = z * bn_scale_ref[i + 1:i + 2, :] + bn_shift_ref[i + 1:i + 2, :]
        h = identity + jnp.maximum(z, 0.0)
        h = jnp.maximum(h, 0.0)                  # relu; dropout identity (eval)

    # Output layer.
    if out_is_scalar:
        # (TB, H) . (H,) as a VPU multiply + cross-lane reduction: avoids an
        # N=1 MXU pass; the width-1 store is tiny either way.
        o_ref[...] = (jnp.sum(h * w_out_ref[...], axis=-1, keepdims=True)
                      + b_out_ref[...])
    else:
        o_ref[...] = (jnp.dot(h, w_out_ref[...],
                              preferred_element_type=jnp.float32)
                      + b_out_ref[...])


def fold_params(params, *, input_size, embed_size):
    """One-time algebraic fold: pos-emb + w_in -> (W_red, pe_const); biases -> BN shift."""
    w_in = params["w_in"]                                   # (2*E*I, H)
    H = w_in.shape[1]
    w_in_r = w_in.reshape(input_size, 2 * embed_size, H)
    w_x = w_in_r[:, :embed_size, :]                         # rows multiplied by broadcast x[b, i]
    w_pe = w_in_r[:, embed_size:, :]                        # rows multiplied by pos_emb[i, :] (batch-const)
    w_red = w_x.sum(axis=1)                                 # (I, H)
    pe_const = jnp.einsum("ie,ieh->h", params["pos_emb"], w_pe)   # (H,)

    bn_scale = params["bn_scale"]                           # (num_hidden, H)
    bn_shift = params["bn_shift"]
    b_in = params["b_in"].reshape(-1)                       # (H,)
    b_h = params["b_h"]                                     # (num_hidden-1, H)
    shift_eff = jnp.concatenate(
        [((b_in + pe_const) * bn_scale[0] + bn_shift[0])[None, :],
         b_h * bn_scale[1:] + bn_shift[1:]],
        axis=0)                                             # (num_hidden, H)

    output_size = params["w_out"].shape[1]
    if output_size == 1:
        w_out = params["w_out"].reshape(1, H)               # lane-dense row for VPU reduction
    else:
        w_out = params["w_out"]                             # (H, O)

    return dict(
        w_red=w_red.astype(jnp.bfloat16),
        w_h=params["w_h"].astype(jnp.bfloat16),
        bn_scale=bn_scale.astype(jnp.float32),
        bn_shift=shift_eff.astype(jnp.float32),
        w_out=w_out.astype(jnp.float32),
        b_out=params["b_out"].reshape(1, output_size).astype(jnp.float32),
    )


def linear_forward(x, folded, *, block_b=128):
    """Forward pass of `Linear` (positional-embedding path, eval mode)."""
    B, input_size = x.shape
    w_red = folded["w_red"]
    H = w_red.shape[1]
    w_h = folded["w_h"]
    L = w_h.shape[0]                                        # num_hidden - 1
    assert L >= 1, "this kernel assumes num_hidden >= 2"
    num_hidden = L + 1
    w_out = folded["w_out"]
    b_out = folded["b_out"]
    output_size = b_out.shape[1]
    out_is_scalar = output_size == 1

    # Batch tiling: pad to a multiple of the tile so the grid divides evenly.
    tile_b = min(block_b, _round_up(B, 8))
    B_pad = _round_up(B, tile_b)
    x_p = x if B_pad == B else jnp.pad(x, ((0, B_pad - B), (0, 0)))
    nb = B_pad // tile_b

    kernel = functools.partial(_linear_kernel, L, out_is_scalar)

    out = pl.pallas_call(
        kernel,
        out_shape=jax.ShapeDtypeStruct((B_pad, output_size), jnp.float32),
        grid=(nb,),
        in_specs=[
            pl.BlockSpec((tile_b, input_size), lambda i: (i, 0)),     # x: streamed per tile
            pl.BlockSpec((input_size, H), lambda i: (0, 0)),          # W_red: resident
            pl.BlockSpec((L, H, H), lambda i: (0, 0, 0)),             # hidden weights: resident
            pl.BlockSpec((num_hidden, H), lambda i: (0, 0)),          # BN scale
            pl.BlockSpec((num_hidden, H), lambda i: (0, 0)),          # BN shift (biases folded in)
            pl.BlockSpec(w_out.shape, lambda i: (0, 0)),              # output weight
            pl.BlockSpec((1, output_size), lambda i: (0, 0)),         # output bias
        ],
        out_specs=pl.BlockSpec((tile_b, output_size), lambda i: (i, 0)),
        compiler_params=pltpu.CompilerParams(
            dimension_semantics=("parallel",)),               # 2 TCs on v7x; no-op on v5e/v6e
    )(x_p, w_red, w_h, folded["bn_scale"], folded["bn_shift"], w_out, b_out)

    return out[:B]


def init_params(key, *, input_size=24, embed_size=128, hidden_size=128,
                num_hidden=4, output_size=1, bn_eps=1e-5):
    """Deterministic synthetic parameter init matching the module's shapes."""
    ks = jax.random.split(key, 12)
    feat = 2 * embed_size * input_size
    n_hidden_layers = num_hidden - 1
    n_bn = num_hidden  # input BN + (num_hidden-1) hidden BNs

    pos_emb = jax.random.normal(ks[0], (input_size, embed_size), jnp.float32)

    w_in = jax.random.normal(ks[1], (feat, hidden_size), jnp.float32) * (1.0 / jnp.sqrt(feat))
    b_in = jax.random.normal(ks[2], (1, hidden_size), jnp.float32) * 0.01

    w_h = jax.random.normal(ks[3], (n_hidden_layers, hidden_size, hidden_size),
                            jnp.float32) * (1.0 / jnp.sqrt(hidden_size))
    b_h = jax.random.normal(ks[4], (n_hidden_layers, hidden_size), jnp.float32) * 0.01

    w_out = jax.random.normal(ks[5], (hidden_size, output_size), jnp.float32) * (1.0 / jnp.sqrt(hidden_size))
    b_out = jax.random.normal(ks[6], (1, output_size), jnp.float32) * 0.01

    # BatchNorm (eval mode) folded: scale = gamma / sqrt(var + eps); shift = beta - mean*scale
    gamma = 1.0 + 0.05 * jax.random.normal(ks[7], (n_bn, hidden_size), jnp.float32)
    beta = 0.05 * jax.random.normal(ks[8], (n_bn, hidden_size), jnp.float32)
    run_mean = 0.1 * jax.random.normal(ks[9], (n_bn, hidden_size), jnp.float32)
    run_var = 1.0 + 0.1 * jax.random.uniform(ks[10], (n_bn, hidden_size), jnp.float32)
    bn_scale = gamma / jnp.sqrt(run_var + bn_eps)
    bn_shift = beta - run_mean * bn_scale

    return dict(pos_emb=pos_emb, w_in=w_in, b_in=b_in, w_h=w_h, b_h=b_h,
                bn_scale=bn_scale, bn_shift=bn_shift, w_out=w_out, b_out=b_out)


def reference_forward(x, params):
    """Pure-JAX f32 reference matching the original PyTorch forward (eval mode)."""
    B, I = x.shape
    pos_emb = params["pos_emb"]
    E = pos_emb.shape[1]
    x_exp = jnp.broadcast_to(x[:, :, None], (B, I, E))
    pe = jnp.broadcast_to(pos_emb[None, :, :], (B, I, E))
    feats = jnp.concatenate([x_exp, pe], axis=2).reshape(B, -1)
    h = feats @ params["w_in"] + params["b_in"]
    h = h * params["bn_scale"][0] + params["bn_shift"][0]
    h = jnp.maximum(h, 0.0)
    for i in range(params["w_h"].shape[0]):
        z = h @ params["w_h"][i] + params["b_h"][i]
        z = z * params["bn_scale"][i + 1] + params["bn_shift"][i + 1]
        h = h + jnp.maximum(z, 0.0)
        h = jnp.maximum(h, 0.0)
    return h @ params["w_out"] + params["b_out"]


if __name__ == "__main__":
    key = jax.random.PRNGKey(0)
    k_param, k_x = jax.random.split(key)

    input_size = 24
    embed_size = 128
    hidden_size = 128
    num_hidden = 4
    output_size = 1
    B = 8

    params = init_params(k_param, input_size=input_size, embed_size=embed_size,
                         hidden_size=hidden_size, num_hidden=num_hidden,
                         output_size=output_size)
    x = jax.random.normal(k_x, (B, input_size), jnp.float32)

    folded = fold_params(params, input_size=input_size, embed_size=embed_size)

    out = linear_forward(x, folded)
    out = jax.block_until_ready(out)

    assert out.shape == (B, output_size), out.shape
    assert out.dtype == jnp.float32
    assert bool(jnp.all(jnp.isfinite(out)))

    # Sanity check vs. the unfolded f32 reference (bf16 matmul weights -> loose tol).
    ref = reference_forward(x, params)
    err = float(jnp.max(jnp.abs(out - ref)) / (jnp.max(jnp.abs(ref)) + 1e-6))
    assert err < 5e-2, f"mismatch vs reference: normalized err = {err}"

    print("KERNEL_OK")
</pallas_src>

<mosaic_0001>
module attributes {stable_mosaic.version = 11 : i64} {
  func.func @_linear_kernel(%arg0: i32, %arg1: memref<8x24xf32, #tpu.memory_space<vmem>>, %arg2: memref<24x128xbf16, #tpu.memory_space<vmem>>, %arg3: memref<3x128x128xbf16, #tpu.memory_space<vmem>>, %arg4: memref<4x128xf32, #tpu.memory_space<vmem>>, %arg5: memref<4x128xf32, #tpu.memory_space<vmem>>, %arg6: memref<1x128xf32, #tpu.memory_space<vmem>>, %arg7: memref<1x1xf32, #tpu.memory_space<vmem>>, %arg8: memref<8x1xf32, #tpu.memory_space<vmem>>) attributes {dimension_semantics = [#tpu.dimension_semantics<parallel>], iteration_bounds = array<i64: 1>, scalar_prefetch = 0 : i64, scratch_operands = 0 : i64, tpu.core_type = #tpu.core_type<tc>, window_params = [{transform_indices = @transform_0, window_bounds = array<i64: 8, 24>}, {pipeline_mode = #tpu.pipeline_mode<synchronous>, transform_indices = @transform_1, window_bounds = array<i64: 24, 128>}, {pipeline_mode = #tpu.pipeline_mode<synchronous>, transform_indices = @transform_2, window_bounds = array<i64: 3, 128, 128>}, {pipeline_mode = #tpu.pipeline_mode<synchronous>, transform_indices = @transform_3, window_bounds = array<i64: 4, 128>}, {pipeline_mode = #tpu.pipeline_mode<synchronous>, transform_indices = @transform_4, window_bounds = array<i64: 4, 128>}, {pipeline_mode = #tpu.pipeline_mode<synchronous>, transform_indices = @transform_5, window_bounds = array<i64: 1, 128>}, {pipeline_mode = #tpu.pipeline_mode<synchronous>, transform_indices = @transform_6, window_bounds = array<i64: 1, 1>}, {transform_indices = @transform_7, window_bounds = array<i64: 8, 1>}]} {
    %c0 = arith.constant 0 : index
    %c0_0 = arith.constant 0 : index
    %0 = vector.load %arg1[%c0, %c0_0] : memref<8x24xf32, #tpu.memory_space<vmem>>, vector<8x24xf32>
    %1 = arith.truncf %0 : vector<8x24xf32> to vector<8x24xbf16>
    %c0_1 = arith.constant 0 : index
    %c0_2 = arith.constant 0 : index
    %2 = vector.load %arg2[%c0_1, %c0_2] : memref<24x128xbf16, #tpu.memory_space<vmem>>, vector<24x128xbf16>
    %cst = arith.constant dense<0.000000e+00> : vector<8x128xf32>
    %3 = tpu.matmul %1, %2, %cst {dimension_numbers = #tpu.dot_dimension_numbers<[1], [0], [0], [1], [0, 0, 1, 1], [], []>} : vector<8x24xbf16>, vector<24x128xbf16>, vector<8x128xf32> -> vector<8x128xf32>
    %c0_3 = arith.constant 0 : index
    %c0_4 = arith.constant 0 : index
    %4 = vector.load %arg4[%c0_3, %c0_4] : memref<4x128xf32, #tpu.memory_space<vmem>>, vector<1x128xf32>
    %5 = vector.broadcast %4 : vector<1x128xf32> to vector<8x128xf32>
    %6 = arith.mulf %3, %5 : vector<8x128xf32>
    %c0_5 = arith.constant 0 : index
    %c0_6 = arith.constant 0 : index
    %7 = vector.load %arg5[%c0_5, %c0_6] : memref<4x128xf32, #tpu.memory_space<vmem>>, vector<1x128xf32>
    %8 = vector.broadcast %7 : vector<1x128xf32> to vector<8x128xf32>
    %9 = arith.addf %6, %8 : vector<8x128xf32>
    %cst_7 = arith.constant 0.000000e+00 : f32
    %10 = vector.broadcast %cst_7 : f32 to vector<8x128xf32>
    %11 = arith.maximumf %9, %10 : vector<8x128xf32>
    %12 = arith.truncf %11 : vector<8x128xf32> to vector<8x128xbf16>
    %c0_8 = arith.constant 0 : index
    %c0_9 = arith.constant 0 : index
    %c0_10 = arith.constant 0 : index
    %13 = vector.load %arg3[%c0_8, %c0_9, %c0_10] : memref<3x128x128xbf16, #tpu.memory_space<vmem>>, vector<1x128x128xbf16>
    %14 = vector.shape_cast %13 : vector<1x128x128xbf16> to vector<128x128xbf16>
    %cst_11 = arith.constant dense<0.000000e+00> : vector<8x128xf32>
    %15 = tpu.matmul %12, %14, %cst_11 {dimension_numbers = #tpu.dot_dimension_numbers<[1], [0], [0], [1], [0, 0, 1, 1], [], []>} : vector<8x128xbf16>, vector<128x128xbf16>, vector<8x128xf32> -> vector<8x128xf32>
    %c1 = arith.constant 1 : index
    %c0_12 = arith.constant 0 : index
    %16 = vector.load %arg4[%c1, %c0_12] : memref<4x128xf32, #tpu.memory_space<vmem>>, vector<1x128xf32>
    %17 = vector.broadcast %16 : vector<1x128xf32> to vector<8x128xf32>
    %18 = arith.mulf %15, %17 : vector<8x128xf32>
    %c1_13 = arith.constant 1 : index
    %c0_14 = arith.constant 0 : index
    %19 = vector.load %arg5[%c1_13, %c0_14] : memref<4x128xf32, #tpu.memory_space<vmem>>, vector<1x128xf32>
    %20 = vector.broadcast %19 : vector<1x128xf32> to vector<8x128xf32>
    %21 = arith.addf %18, %20 : vector<8x128xf32>
    %cst_15 = arith.constant 0.000000e+00 : f32
    %22 = vector.broadcast %cst_15 : f32 to vector<8x128xf32>
    %23 = arith.maximumf %21, %22 : vector<8x128xf32>
    %24 = arith.addf %11, %23 : vector<8x128xf32>
    %cst_16 = arith.constant 0.000000e+00 : f32
    %25 = vector.broadcast %cst_16 : f32 to vector<8x128xf32>
    %26 = arith.maximumf %24, %25 : vector<8x128xf32>
    %27 = arith.truncf %26 : vector<8x128xf32> to vector<8x128xbf16>
    %c1_17 = arith.constant 1 : index
    %c0_18 = arith.constant 0 : index
    %c0_19 = arith.constant 0 : index
    %28 = vector.load %arg3[%c1_17, %c0_18, %c0_19] : memref<3x128x128xbf16, #tpu.memory_space<vmem>>, vector<1x128x128xbf16>
    %29 = vector.shape_cast %28 : vector<1x128x128xbf16> to vector<128x128xbf16>
    %cst_20 = arith.constant dense<0.000000e+00> : vector<8x128xf32>
    %30 = tpu.matmul %27, %29, %cst_20 {dimension_numbers = #tpu.dot_dimension_numbers<[1], [0], [0], [1], [0, 0, 1, 1], [], []>} : vector<8x128xbf16>, vector<128x128xbf16>, vector<8x128xf32> -> vector<8x128xf32>
    %c2 = arith.constant 2 : index
    %c0_21 = arith.constant 0 : index
    %31 = vector.load %arg4[%c2, %c0_21] : memref<4x128xf32, #tpu.memory_space<vmem>>, vector<1x128xf32>
    %32 = vector.broadcast %31 : vector<1x128xf32> to vector<8x128xf32>
    %33 = arith.mulf %30, %32 : vector<8x128xf32>
    %c2_22 = arith.constant 2 : index
    %c0_23 = arith.constant 0 : index
    %34 = vector.load %arg5[%c2_22, %c0_23] : memref<4x128xf32, #tpu.memory_space<vmem>>, vector<1x128xf32>
    %35 = vector.broadcast %34 : vector<1x128xf32> to vector<8x128xf32>
    %36 = arith.addf %33, %35 : vector<8x128xf32>
    %cst_24 = arith.constant 0.000000e+00 : f32
    %37 = vector.broadcast %cst_24 : f32 to vector<8x128xf32>
    %38 = arith.maximumf %36, %37 : vector<8x128xf32>
    %39 = arith.addf %26, %38 : vector<8x128xf32>
    %cst_25 = arith.constant 0.000000e+00 : f32
    %40 = vector.broadcast %cst_25 : f32 to vector<8x128xf32>
    %41 = arith.maximumf %39, %40 : vector<8x128xf32>
    %42 = arith.truncf %41 : vector<8x128xf32> to vector<8x128xbf16>
    %c2_26 = arith.constant 2 : index
    %c0_27 = arith.constant 0 : index
    %c0_28 = arith.constant 0 : index
    %43 = vector.load %arg3[%c2_26, %c0_27, %c0_28] : memref<3x128x128xbf16, #tpu.memory_space<vmem>>, vector<1x128x128xbf16>
    %44 = vector.shape_cast %43 : vector<1x128x128xbf16> to vector<128x128xbf16>
    %cst_29 = arith.constant dense<0.000000e+00> : vector<8x128xf32>
    %45 = tpu.matmul %42, %44, %cst_29 {dimension_numbers = #tpu.dot_dimension_numbers<[1], [0], [0], [1], [0, 0, 1, 1], [], []>} : vector<8x128xbf16>, vector<128x128xbf16>, vector<8x128xf32> -> vector<8x128xf32>
    %c3 = arith.constant 3 : index
    %c0_30 = arith.constant 0 : index
    %46 = vector.load %arg4[%c3, %c0_30] : memref<4x128xf32, #tpu.memory_space<vmem>>, vector<1x128xf32>
    %47 = vector.broadcast %46 : vector<1x128xf32> to vector<8x128xf32>
    %48 = arith.mulf %45, %47 : vector<8x128xf32>
    %c3_31 = arith.constant 3 : index
    %c0_32 = arith.constant 0 : index
    %49 = vector.load %arg5[%c3_31, %c0_32] : memref<4x128xf32, #tpu.memory_space<vmem>>, vector<1x128xf32>
    %50 = vector.broadcast %49 : vector<1x128xf32> to vector<8x128xf32>
    %51 = arith.addf %48, %50 : vector<8x128xf32>
    %cst_33 = arith.constant 0.000000e+00 : f32
    %52 = vector.broadcast %cst_33 : f32 to vector<8x128xf32>
    %53 = arith.maximumf %51, %52 : vector<8x128xf32>
    %54 = arith.addf %41, %53 : vector<8x128xf32>
    %cst_34 = arith.constant 0.000000e+00 : f32
    %55 = vector.broadcast %cst_34 : f32 to vector<8x128xf32>
    %56 = arith.maximumf %54, %55 : vector<8x128xf32>
    %c0_35 = arith.constant 0 : index
    %c0_36 = arith.constant 0 : index
    %57 = vector.load %arg6[%c0_35, %c0_36] : memref<1x128xf32, #tpu.memory_space<vmem>>, vector<1x128xf32>
    %58 = vector.broadcast %57 : vector<1x128xf32> to vector<8x128xf32>
    %59 = arith.mulf %56, %58 : vector<8x128xf32>
    %cst_37 = arith.constant dense<0.000000e+00> : vector<8xf32>
    %60 = vector.multi_reduction <add>, %59, %cst_37 [1] : vector<8x128xf32> to vector<8xf32>
    %61 = vector.shape_cast %60 : vector<8xf32> to vector<8x1xf32>
    %c0_38 = arith.constant 0 : index
    %c0_39 = arith.constant 0 : index
    %62 = vector.load %arg7[%c0_38, %c0_39] : memref<1x1xf32, #tpu.memory_space<vmem>>, vector<1x1xf32>
    %63 = vector.broadcast %62 : vector<1x1xf32> to vector<8x1xf32>
    %64 = arith.addf %61, %63 : vector<8x1xf32>
    %c0_40 = arith.constant 0 : index
    %c0_41 = arith.constant 0 : index
    %65 = vector.load %arg8[%c0_40, %c0_41] : memref<8x1xf32, #tpu.memory_space<vmem>>, vector<8x1xf32>
    tpu.vector_store %arg8[%c0_40, %c0_41], %64 {strides = array<i32>} : memref<8x1xf32, #tpu.memory_space<vmem>>, vector<8x1xf32>,
    return
  }
  func.func @transform_0(%arg0: i32) -> (i32, i32) {
    %c0_i32 = arith.constant 0 : i32
    %c0_i32_0 = arith.constant 0 : i32
    return %arg0, %c0_i32 : i32, i32
  }
  func.func @transform_1(%arg0: i32) -> (i32, i32) {
    %c0_i32 = arith.constant 0 : i32
    %c0_i32_0 = arith.constant 0 : i32
    %c0_i32_1 = arith.constant 0 : i32
    return %c0_i32, %c0_i32_0 : i32, i32
  }
  func.func @transform_2(%arg0: i32) -> (i32, i32, i32) {
    %c0_i32 = arith.constant 0 : i32
    %c0_i32_0 = arith.constant 0 : i32
    %c0_i32_1 = arith.constant 0 : i32
    %c0_i32_2 = arith.constant 0 : i32
    return %c0_i32, %c0_i32_0, %c0_i32_1 : i32, i32, i32
  }
  func.func @transform_3(%arg0: i32) -> (i32, i32) {
    %c0_i32 = arith.constant 0 : i32
    %c0_i32_0 = arith.constant 0 : i32
    %c0_i32_1 = arith.constant 0 : i32
    return %c0_i32, %c0_i32_0 : i32, i32
  }
  func.func @transform_4(%arg0: i32) -> (i32, i32) {
    %c0_i32 = arith.constant 0 : i32
    %c0_i32_0 = arith.constant 0 : i32
    %c0_i32_1 = arith.constant 0 : i32
    return %c0_i32, %c0_i32_0 : i32, i32
  }
  func.func @transform_5(%arg0: i32) -> (i32, i32) {
    %c0_i32 = arith.constant 0 : i32
    %c0_i32_0 = arith.constant 0 : i32
    %c0_i32_1 = arith.constant 0 : i32
    return %c0_i32, %c0_i32_0 : i32, i32
  }
  func.func @transform_6(%arg0: i32) -> (i32, i32) {
    %c0_i32 = arith.constant 0 : i32
    %c0_i32_0 = arith.constant 0 : i32
    %c0_i32_1 = arith.constant 0 : i32
    return %c0_i32, %c0_i32_0 : i32, i32
  }
  func.func @transform_7(%arg0: i32) -> (i32, i32) {
    %c0_i32 = arith.constant 0 : i32
    %c0_i32_0 = arith.constant 0 : i32
    return %arg0, %c0_i32 : i32, i32
  }
}

</mosaic_0001>

<bundles_post_ra>
// kernel: tpu_custom_call.1
= control target key start
LH: loop header
LB: loop body
LE: loop exit
PB: predicated region body
PF: predicated region fallthrough
CT: control target
= control target key end

     0   :  { %s737_s0 = inlined_call_operand.hbm [shape: f32[8,24], index: 0, kind: input, shape index: {}]   ;;  %s738_s1 = inlined_call_operand.hbm [shape: bf16[24,128], index: 1, kind: input, shape index: {}]   ;;  %s739_s2 = inlined_call_operand.hbm [shape: bf16[3,128,128], index: 2, kind: input, shape index: {}]   ;;  %s740_s3 = inlined_call_operand.vmem [shape: f32[4,128], index: 3, kind: input, shape index: {}]   ;;  %s741_s4 = inlined_call_operand.hbm [shape: f32[4,128], index: 4, kind: input, shape index: {}]   ;;  %s742_s5 = inlined_call_operand.vmem [shape: f32[1,128], index: 5, kind: input, shape index: {}]   ;;  %s743_s6 = inlined_call_operand.<no memory space> [shape: f32[1,1], index: 6, kind: input, shape index: {}]   ;;  %s744_s7 = inlined_call_operand.vmem [shape: f32[8,1], index: 7, kind: output, shape index: {}]  }
   0x1   :  { %v12_v0 = vstv %s743_s6 }
   0x2   :  { %13 = vst [vmem:[#allocation2] sm:$0x1] %v12_v0 }
   0x3   :  { %14 = vsyncpa [#allocation4], 0 }
   0x4   :  { %15 = vsyncpa [#allocation6], 0  ;;  %s32_s28 = sshll.u32 %s738_s1, 4  ;;  %s33_s28 = int_to_ptr.hbm [resolvable:$true] %s32_s28 }
   0x5   :  { %16 = vsyncpa [#allocation9], 0  ;;  %s658_s29 = smov [#allocation5]   ;;  %s22_s10 = sshll.u32 %s737_s0, 4  ;;  %s23_s10 = int_to_ptr.hbm [resolvable:$true] %s22_s10 }
   0x6   :  { %s34_s30 = sshll.u32 %s658_s29, 4  ;;  %s659_s11 = smov 64   ;;  %s35_s30 = int_to_ptr.vmem [resolvable:$true] %s34_s30 }
   0x7   :  { %s660_s12 = smov 4   ;;  %s661_s6 = smov [#allocation3]  }
   0x8   :  { %40 = dma.hbm_to_vmem [thread:$0]  %s33_s28, 192, %s35_s30, [#allocation6], %s659_s11, %s659_s11, %s660_s12  }
   0x9   :  { %s24_s13 = sshll.u32 %s661_s6, 4  ;;  %s45_s16 = sshll.u32 %s739_s2, 4  ;;  %s25_s13 = int_to_ptr.vmem [resolvable:$true] %s24_s13  ;;  %s46_s16 = int_to_ptr.hbm [resolvable:$true] %s45_s16 }
   0xa   :  { %27 = dma.hbm_to_vmem [thread:$0]  %s23_s10, 128, %s25_s13, [#allocation4]  }
   0xb   :  { %s61_s18 = sshll.u32 %s741_s4, 4  ;;  %s662_s19 = smov [#allocation7]   ;;  %s62_s18 = int_to_ptr.hbm [resolvable:$true] %s61_s18 }
   0xc   :  { %s47_s20 = sshll.u32 %s662_s19, 4  ;;  %s663_s0 = smov [#allocation8]   ;;  %s48_s20 = int_to_ptr.vmem [resolvable:$true] %s47_s20 }
   0xd   :  { %53 = dma.hbm_to_vmem [thread:$0]  %s46_s16, 3072, %s48_s20, [#allocation6], %s659_s11, %s659_s11, %s660_s12  }
   0xe   :  { %s63_s21 = sshll.u32 %s663_s0, 4  ;;  %s64_s21 = int_to_ptr.vmem [resolvable:$true] %s63_s21 }
   0xf   :  { %66 = dma.hbm_to_vmem [thread:$0]  %s62_s18, 64, %s64_s21, [#allocation9]  }
  0x10   :  { %652 = dma.done.wait [#allocation4], 128  }
  0x11   :  { %653 = vsyncadd [#allocation4], 4294967168 }
  0x12   :  { %654 = dma.done.wait [#allocation6], 3264  }
  0x13   :  { %655 = vsyncadd [#allocation6], 4294964032 }
  0x14   :  { %656 = dma.done.wait [#allocation9], 64  }
  0x15   :  { %657 = vsyncadd [#allocation9], 4294967232  ;;  %v92_v1 = vld [vmem:[#allocation5 + $0x8] sm:$0xf]  ;;  %vm106_vm0 = vcmask 1043456   ;;  %v522_v4 = vld [vmem:[#allocation7 + $0x30] sm:$0xff] }
  0x16   :  { %v98_v2 = vunpack.c.l.b16 %v92_v1  ;;  %v523_v3 = vld [vmem:[#allocation7 + $0x38] sm:$0xff]  ;;  %v88_v8 = vld [vmem:[#allocation3] sm:$0xff]  ;;  %vm102_vm1 = vcmask 195584   ;;  %v520_v11 = vld [vmem:[#allocation7 + $0x20] sm:$0xff]  ;;  %vm405_vm2 = vcmask 7168  }
  0x17   :  { %195 = vmatpush.bf16.msra.mxu1 %v523_v3  ;;  %v515_v7 = vld [vmem:[#allocation5] sm:$0xff]  ;;  %v521_v9 = vld [vmem:[#allocation7 + $0x28] sm:$0xff]  ;;  %v89_v10 = vpack.c.bf16 %v88_v8, %v88_v8  ;;  %v516_v15 = vld [vmem:[#allocation7] sm:$0xff] }
  0x18   :  { %v100_v5 = vpack.c.b16 %v98_v2, %v98_v2  ;;  %v519_v12 = vld [vmem:[#allocation7 + $0x18] sm:$0xff]  ;;  %v518_v13 = vld [vmem:[#allocation7 + $0x10] sm:$0xff]  ;;  %v517_v14 = vld [vmem:[#allocation7 + $0x8] sm:$0xff] }
  0x19   :  { %v531_v16 = vld [vmem:[#allocation7 + $0x78] sm:$0xff]  ;;  %v530_v17 = vld [vmem:[#allocation7 + $0x70] sm:$0xff]  ;;  %v529_v18 = vld [vmem:[#allocation7 + $0x68] sm:$0xff] }
  0x1a   :  { %v108_v6 = vsel %vm106_vm0, %v100_v5, 0  ;;  %283 = vmatpush.bf16.msra.mxu2 %v531_v16  ;;  %v528_v19 = vld [vmem:[#allocation7 + $0x60] sm:$0xff]  ;;  %v527_v20 = vld [vmem:[#allocation7 + $0x58] sm:$0xff]  ;;  %v546_v21 = vld [vmem:[%s740_s3] ss:$0 sm:$0xff] }
  0x1b   :  { %116 = vmatpush.bf16.msra.mxu0 %v108_v6  ;;  %196 = vmatpush.bf16.msra.mxu1 %v522_v4  ;;  %v547_v22 = vld [vmem:[#allocation8] ss:$0 sm:$0xff]  ;;  %v526_v29 = vld [vmem:[#allocation7 + $0x50] sm:$0xff]  ;;  %v525_v30 = vld [vmem:[#allocation7 + $0x48] sm:$0xff] }
  0x1c   :  { %v524_v31 = vld [vmem:[#allocation7 + $0x40] sm:$0xff]  ;;  %v539_v32 = vld [vmem:[#allocation7 + $0xb8] sm:$0xff]  ;;  %v538_v33 = vld [vmem:[#allocation7 + $0xb0] sm:$0xff] }
  0x1d   :  { %371 = vmatpush.bf16.msra.mxu3 %v539_v32  ;;  %v537_v34 = vld [vmem:[#allocation7 + $0xa8] sm:$0xff]  ;;  %v536_v35 = vld [vmem:[#allocation7 + $0xa0] sm:$0xff]  ;;  %v535_v36 = vld [vmem:[#allocation7 + $0x98] sm:$0xff] }
  0x1e   :  { %284 = vmatpush.bf16.msra.mxu2 %v530_v17  ;;  %v548_v37 = vld [vmem:[%s740_s3 + $0x1] ss:$0 sm:$0xff]  ;;  %v549_v38 = vld [vmem:[#allocation8 + $0x1] ss:$0 sm:$0xff]  ;;  %v534_v47 = vld [vmem:[#allocation7 + $0x90] sm:$0xff] }
  0x1f   :  { %117 = vmatpush.bf16.msra.mxu0 %v515_v7  ;;  %197 = vmatpush.bf16.msra.mxu1 %v521_v9  ;;  %v533_v48 = vld [vmem:[#allocation7 + $0x88] sm:$0xff]  ;;  %v532_v49 = vld [vmem:[#allocation7 + $0x80] sm:$0xff] }
  0x20   :  { %v550_v50 = vld [vmem:[%s740_s3 + $0x2] ss:$0 sm:$0xff]  ;;  %v551_v51 = vld [vmem:[#allocation8 + $0x2] ss:$0 sm:$0xff]  ;;  %v552_v60 = vld [vmem:[%s740_s3 + $0x3] ss:$0 sm:$0xff] }
  0x21   :  { %372 = vmatpush.bf16.msra.mxu3 %v538_v33  ;;  %v553_v61 = vld [vmem:[#allocation8 + $0x3] ss:$0 sm:$0xff]  ;;  %v554_v3 = vld [vmem:[%s742_s5] ss:$0 sm:$0xff] }
  0x22   :  { %418 = vmatmul.msk.bf16.vlgmr.msra.gmra.mxu0 %vm102_vm1, %v89_v10  ;;  %285 = vmatpush.bf16.msra.mxu2 %v529_v18  ;;  %v555_v7 = vld [vmem:[#allocation2] ss:$0 sm:$0xff] }
  0x23   :  { %198 = vmatpush.bf16.msra.mxu1 %v520_v11 }
  0x25   :  { %373 = vmatpush.bf16.msra.mxu3 %v537_v34 }
  0x26   :  { %286 = vmatpush.bf16.msra.mxu2 %v528_v19 }
  0x27   :  { %199 = vmatpush.bf16.msra.mxu1 %v519_v12 }
  0x29   :  { %374 = vmatpush.bf16.msra.mxu3 %v536_v35 }
  0x2a   :  { %287 = vmatpush.bf16.msra.mxu2 %v527_v20 }
  0x2b   :  { %200 = vmatpush.bf16.msra.mxu1 %v518_v13 }
  0x2d   :  { %375 = vmatpush.bf16.msra.mxu3 %v535_v36 }
  0x2e   :  { %288 = vmatpush.bf16.msra.mxu2 %v526_v29 }
  0x2f   :  { %201 = vmatpush.bf16.msra.mxu1 %v517_v14 }
  0x31   :  { %376 = vmatpush.bf16.msra.mxu3 %v534_v47 }
  0x32   :  { %289 = vmatpush.bf16.msra.mxu2 %v525_v30 }
  0x33   :  { %202 = vmatpush.bf16.msra.mxu1 %v516_v15 }
  0x35   :  { %377 = vmatpush.bf16.msra.mxu3 %v533_v48 }
  0x36   :  { %290 = vmatpush.bf16.msra.mxu2 %v524_v31 }
  0x39   :  { %378 = vmatpush.bf16.msra.mxu3 %v532_v49 }
  0x9f   :  { %v119_v23 = vpop.f32.mrf.mxu0 }
  0xa0   :  { %v125_v24 = vmul.f32 %v546_v21, %v119_v23 }
  0xa2   :  { %v128_v25 = vadd.f32 %v547_v22, %v125_v24 }
  0xa4   :  { %v129_v26 = vmax.f32 %v128_v25, 0.0 }
  0xa6   :  { %v130_v27 = vpack.c.bf16 %v129_v26, %v129_v26 }
  0xa7   :  { %v121_v28 = vpop.f32.mrf.mxu0 }
  0xa8   :  { %203 = vmatmul.bf16.vlgmr.msra.gmra.mxu1 %v130_v27 }
 0x125   :  { %v204_v39 = vpop.f32.mrf.mxu1 }
 0x126   :  { %v210_v40 = vmul.f32 %v548_v37, %v204_v39 }
 0x128   :  { %v213_v41 = vadd.f32 %v549_v38, %v210_v40 }
 0x12a   :  { %v214_v42 = vmax.f32 %v213_v41, 0.0 }
 0x12c   :  { %v215_v43 = vadd.f32 %v214_v42, %v129_v26 }
 0x12d   :  { %v206_v44 = vpop.f32.mrf.mxu1 }
 0x12e   :  { %v216_v45 = vmax.f32 %v215_v43, 0.0 }
 0x130   :  { %v217_v46 = vpack.c.bf16 %v216_v45, %v216_v45 }
 0x132   :  { %291 = vmatmul.bf16.vlgmr.msra.gmra.mxu2 %v217_v46 }
 0x1b5   :  { %v292_v52 = vpop.f32.mrf.mxu2 }
 0x1b6   :  { %v298_v53 = vmul.f32 %v550_v50, %v292_v52 }
 0x1b8   :  { %v301_v54 = vadd.f32 %v551_v51, %v298_v53 }
 0x1ba   :  { %v302_v55 = vmax.f32 %v301_v54, 0.0 }
 0x1bc   :  { %v303_v56 = vadd.f32 %v302_v55, %v216_v45 }
 0x1bd   :  { %v294_v57 = vpop.f32.mrf.mxu2 }
 0x1be   :  { %v304_v58 = vmax.f32 %v303_v56, 0.0 }
 0x1c0   :  { %v305_v59 = vpack.c.bf16 %v304_v58, %v304_v58 }
 0x1c2   :  { %379 = vmatmul.bf16.vlgmr.msra.gmra.mxu3 %v305_v59 }
 0x245   :  { %v380_v62 = vpop.f32.mrf.mxu3 }
 0x246   :  { %v386_v63 = vmul.f32 %v552_v60, %v380_v62 }
 0x248   :  { %v389_v0 = vadd.f32 %v553_v61, %v386_v63 }
 0x24a   :  { %v390_v1 = vmax.f32 %v389_v0, 0.0 }
 0x24c   :  { %v391_v2 = vadd.f32 %v390_v1, %v304_v58 }
 0x24d   :  { %v382_v4 = vpop.f32.mrf.mxu3 }
 0x24e   :  { %v392_v5 = vmax.f32 %v391_v2, 0.0 }
 0x250   :  { %v397_v6 = vmul.f32 %v554_v3, %v392_v5 }
 0x252   :  { %398 = vadd.xlane.f32.xlu0 %v397_v6 }
 0x2c5   :  { %v399_v8 = vpop.xlane.xlu0 %398 }
 0x2c6   :  { %v404_v9 = vadd.f32 %v555_v7, %v399_v8 }
 0x2c8   :  { %406 = vst.msk [vmem:[%s744_s7] sm:$0xff] %vm405_vm2, %v404_v9 }
 0x2c9   :  { %411 = vsyncpa [#allocation4], 1 }
 0x2ca   :  { %412 = vsyncpa [#allocation6], 1 }
 0x2cb   :  { %413 = vsyncpa [#allocation9], 1 }

</bundles_post_ra>
